<compile_context>
chip_gen: v7x
topology: tpu7x:2x2x1
jax: 0.10.0
libtpu: 0.0.40
codegen_flags: <defaults>
</compile_context>

<pallas_src>
import jax
import jax.numpy as jnp
from jax.experimental import pallas as pl
from jax.experimental.pallas import tpu as pltpu

N_STATES = 22
N_ACTIONS = 3

_LANE = 128
_SUBLANE = 8
_VMEM_BUDGET = 16 * 1024 * 1024      # sizing budget for blocks + intermediates
_VMEM_LIMIT = 40 * 1024 * 1024       # scoped limit: > budget w/ margin, < v7x 64 MiB


def _cdiv(a, b):
    return -(-a // b)


def _round_up(a, b):
    return _cdiv(a, b) * b


def _mlp_kernel(x_ref, w1t_ref, b1_ref, w2t_ref, b2_ref, out_ref):
    # x: (TB, 22)  w1t: (22, H)  b1: (1, H)  w2t: (H, 3)  b2: (1, 3)  out: (TB, 3)
    # Layer 1 on the MXU with f32 accumulation.
    h = jnp.dot(x_ref[...], w1t_ref[...], preferred_element_type=jnp.float32)
    # Bias + sigmoid in f32 (EUP path; avoids bf16 pack/unpack on v5e).
    h = jax.nn.sigmoid(h + b1_ref[...].astype(jnp.float32))
    # Layer 2.  Cast is a no-op for f32 params; feeds bf16 params their native dtype.
    o = jnp.dot(h.astype(w2t_ref.dtype), w2t_ref[...],
                preferred_element_type=jnp.float32)
    out_ref[...] = (o + b2_ref[...].astype(jnp.float32)).astype(out_ref.dtype)


def _bytes_per_row(hidden, itemsize, double_buffered):
    """Conservative VMEM bytes per batch row (accounts for 128-lane tile padding)."""
    lane_tiles = lambda n: _cdiv(n, _LANE)
    io = (lane_tiles(N_STATES) + lane_tiles(N_ACTIONS)) * _LANE * itemsize
    if double_buffered:
        io *= 2
    # f32 intermediates: h, sigmoid(h), o (counted separately - no reuse assumed).
    inter = (2 * lane_tiles(hidden) + lane_tiles(N_ACTIONS)) * _LANE * 4
    return io + inter


def _cost_estimate(rows, hidden, itemsize):
    flops = 2 * rows * (N_STATES * hidden + hidden * N_ACTIONS)
    transcendentals = rows * hidden              # one exp per sigmoid element
    bytes_accessed = itemsize * (
        N_STATES * rows                          # x
        + hidden * N_STATES + hidden             # w1, b1
        + N_ACTIONS * hidden + N_ACTIONS         # w2, b2
        + N_ACTIONS * rows)                      # out
    return pl.CostEstimate(flops=flops, transcendentals=transcendentals,
                           bytes_accessed=bytes_accessed)


def steer_acc_break_forward(x, w1, b1, w2, b2, *,
                            single_block_max_rows=None, tile_rows=None):
    """Fused forward pass of Steer_Acc_Break.

    x:  [B, 22]                         (row-major, PyTorch convention)
    w1: [H, 22]   b1: [H] or [H, 1]     (PyTorch nn.Linear [out, in] layout)
    w2: [3, H]    b2: [3] or [3, 1]
    returns [B, 3]
    """
    B, n_in = x.shape
    assert n_in == N_STATES, f"expected {N_STATES} input features, got {n_in}"
    H = w1.shape[0]
    itemsize = jnp.dtype(x.dtype).itemsize

    # Tiny weight transposes / bias reshapes in the wrapper (a few KiB, one-off).
    w1t = w1.T                                  # (22, H)
    w2t = w2.T                                  # (H, 3)
    b1r = jnp.reshape(b1, (1, H))
    b2r = jnp.reshape(b2, (1, N_ACTIONS))

    if single_block_max_rows is None:
        single_block_max_rows = max(
            _SUBLANE, _VMEM_BUDGET // _bytes_per_row(H, itemsize, False))

    # ---------------- small / medium batch: single block, no grid ----------------
    if B <= single_block_max_rows:
        out = pl.pallas_call(
            _mlp_kernel,
            out_shape=jax.ShapeDtypeStruct((B, N_ACTIONS), x.dtype),
            in_specs=[pl.BlockSpec(memory_space=pltpu.MemorySpace.VMEM)] * 5,
            out_specs=pl.BlockSpec(memory_space=pltpu.MemorySpace.VMEM),
            compiler_params=pltpu.CompilerParams(vmem_limit_bytes=_VMEM_LIMIT),
            cost_estimate=_cost_estimate(B, H, itemsize),
        )(x, w1t, b1r, w2t, b2r)
        return out

    # ---------------- large batch: batch-tiled "parallel" grid -------------------
    if tile_rows is None:
        tb_max = max(_SUBLANE,
                     (_VMEM_BUDGET // _bytes_per_row(H, itemsize, True))
                     // _SUBLANE * _SUBLANE)
        n_tiles = max(2, _cdiv(B, tb_max))       # >= 2 tiles: feed both v7x cores
        tb = _round_up(_cdiv(B, n_tiles), _SUBLANE)
    else:
        tb = _round_up(max(int(tile_rows), _SUBLANE), _SUBLANE)
    n_tiles = _cdiv(B, tb)
    b_pad = n_tiles * tb

    if b_pad != B:
        # Rare tail padding (at most ~8 rows per tile with the auto tile choice).
        # Padded rows compute finite garbage that is sliced off below.
        x_in = jnp.zeros((b_pad, N_STATES), x.dtype).at[:B, :].set(x)
    else:
        x_in = x

    out = pl.pallas_call(
        _mlp_kernel,
        out_shape=jax.ShapeDtypeStruct((b_pad, N_ACTIONS), x.dtype),
        grid_spec=pltpu.PrefetchScalarGridSpec(
            num_scalar_prefetch=0,
            grid=(n_tiles,),
            in_specs=[
                pl.BlockSpec((tb, N_STATES), lambda i: (i, 0)),
                # Constant index maps -> weights/biases stay VMEM-resident.
                pl.BlockSpec((N_STATES, H), lambda i: (0, 0)),
                pl.BlockSpec((1, H), lambda i: (0, 0)),
                pl.BlockSpec((H, N_ACTIONS), lambda i: (0, 0)),
                pl.BlockSpec((1, N_ACTIONS), lambda i: (0, 0)),
            ],
            out_specs=pl.BlockSpec((tb, N_ACTIONS), lambda i: (i, 0)),
        ),
        compiler_params=pltpu.CompilerParams(
            dimension_semantics=("parallel",),   # shards across v7x's 2 TCs
            vmem_limit_bytes=_VMEM_LIMIT),
        cost_estimate=_cost_estimate(b_pad, H, itemsize),
    )(x_in, w1t, b1r, w2t, b2r)

    if b_pad != B:
        out = out[:B]
    return out


def init_params(key, hidden_dimension, dtype=jnp.float32):
    """PyTorch nn.Linear-style init (uniform +/- 1/sqrt(fan_in)), [out, in] layout."""
    k1, k2, k3, k4 = jax.random.split(key, 4)
    bound1 = 1.0 / jnp.sqrt(jnp.float32(N_STATES))
    bound2 = 1.0 / jnp.sqrt(jnp.float32(hidden_dimension))
    w1 = jax.random.uniform(k1, (hidden_dimension, N_STATES), dtype,
                            minval=-bound1, maxval=bound1)
    b1 = jax.random.uniform(k2, (hidden_dimension,), dtype,
                            minval=-bound1, maxval=bound1)
    w2 = jax.random.uniform(k3, (N_ACTIONS, hidden_dimension), dtype,
                            minval=-bound2, maxval=bound2)
    b2 = jax.random.uniform(k4, (N_ACTIONS,), dtype,
                            minval=-bound2, maxval=bound2)
    return w1, b1, w2, b2


if __name__ == "__main__":
    key = jax.random.PRNGKey(0)
    k_x, k_p, k_x2, k_x3 = jax.random.split(key, 4)

    hidden_dimension = 32
    w1, b1, w2, b2 = init_params(k_p, hidden_dimension)

    def ref_fn(xx):
        return jax.nn.sigmoid(xx @ w1.T + b1.reshape(1, -1)) @ w2.T + b2.reshape(1, -1)

    # Small batch -> single-block (no-grid, no-pad, no-transpose) path.
    batch = 8
    x = jax.random.normal(k_x, (batch, N_STATES), jnp.float32)
    out = jax.block_until_ready(steer_acc_break_forward(x, w1, b1, w2, b2))
    assert out.shape == (batch, N_ACTIONS)
    assert jnp.allclose(out, ref_fn(x), atol=1e-5, rtol=1e-5)

    # Force the batch-tiled "parallel" grid path at a small size (divisible case).
    batch2 = 2048
    x2 = jax.random.normal(k_x2, (batch2, N_STATES), jnp.float32)
    out2 = jax.block_until_ready(
        steer_acc_break_forward(x2, w1, b1, w2, b2,
                                single_block_max_rows=0, tile_rows=512))
    assert out2.shape == (batch2, N_ACTIONS)
    assert jnp.allclose(out2, ref_fn(x2), atol=1e-5, rtol=1e-5)

    # Grid path with a ragged batch (exercises the tail pad/slice handling).
    batch3 = 1000
    x3 = jax.random.normal(k_x3, (batch3, N_STATES), jnp.float32)
    out3 = jax.block_until_ready(
        steer_acc_break_forward(x3, w1, b1, w2, b2,
                                single_block_max_rows=0, tile_rows=384))
    assert out3.shape == (batch3, N_ACTIONS)
    assert jnp.allclose(out3, ref_fn(x3), atol=1e-5, rtol=1e-5)

    print("KERNEL_OK")
</pallas_src>

<mosaic_0001>
module attributes {stable_mosaic.version = 11 : i64} {
  func.func @_mlp_kernel(%arg0: memref<8x22xf32, #tpu.memory_space<vmem>>, %arg1: memref<22x32xf32, #tpu.memory_space<vmem>>, %arg2: memref<1x32xf32, #tpu.memory_space<vmem>>, %arg3: memref<32x3xf32, #tpu.memory_space<vmem>>, %arg4: memref<1x3xf32, #tpu.memory_space<vmem>>, %arg5: memref<8x3xf32, #tpu.memory_space<vmem>>) attributes {dimension_semantics = [], scalar_prefetch = 0 : i64, scratch_operands = 0 : i64, tpu.core_type = #tpu.core_type<tc>} {
    %c0 = arith.constant 0 : index
    %c0_0 = arith.constant 0 : index
    %0 = vector.load %arg0[%c0, %c0_0] : memref<8x22xf32, #tpu.memory_space<vmem>>, vector<8x22xf32>
    %c0_1 = arith.constant 0 : index
    %c0_2 = arith.constant 0 : index
    %1 = vector.load %arg1[%c0_1, %c0_2] : memref<22x32xf32, #tpu.memory_space<vmem>>, vector<22x32xf32>
    %cst = arith.constant dense<0.000000e+00> : vector<8x32xf32>
    %2 = tpu.matmul %0, %1, %cst {dimension_numbers = #tpu.dot_dimension_numbers<[1], [0], [0], [1], [0, 0, 1, 1], [], []>} : vector<8x22xf32>, vector<22x32xf32>, vector<8x32xf32> -> vector<8x32xf32>
    %c0_3 = arith.constant 0 : index
    %c0_4 = arith.constant 0 : index
    %3 = vector.load %arg2[%c0_3, %c0_4] : memref<1x32xf32, #tpu.memory_space<vmem>>, vector<1x32xf32>
    %4 = vector.broadcast %3 : vector<1x32xf32> to vector<8x32xf32>
    %5 = arith.addf %2, %4 : vector<8x32xf32>
    %6 = arith.negf %5 : vector<8x32xf32>
    %7 = math.exp %6 : vector<8x32xf32>
    %cst_5 = arith.constant 1.000000e+00 : f32
    %8 = vector.broadcast %cst_5 : f32 to vector<8x32xf32>
    %9 = arith.addf %8, %7 : vector<8x32xf32>
    %10 = arith.divf %8, %9 : vector<8x32xf32>
    %c0_6 = arith.constant 0 : index
    %c0_7 = arith.constant 0 : index
    %11 = vector.load %arg3[%c0_6, %c0_7] : memref<32x3xf32, #tpu.memory_space<vmem>>, vector<32x3xf32>
    %cst_8 = arith.constant dense<0.000000e+00> : vector<8x3xf32>
    %12 = tpu.matmul %10, %11, %cst_8 {dimension_numbers = #tpu.dot_dimension_numbers<[1], [0], [0], [1], [0, 0, 1, 1], [], []>} : vector<8x32xf32>, vector<32x3xf32>, vector<8x3xf32> -> vector<8x3xf32>
    %c0_9 = arith.constant 0 : index
    %c0_10 = arith.constant 0 : index
    %13 = vector.load %arg4[%c0_9, %c0_10] : memref<1x3xf32, #tpu.memory_space<vmem>>, vector<1x3xf32>
    %14 = vector.broadcast %13 : vector<1x3xf32> to vector<8x3xf32>
    %15 = arith.addf %12, %14 : vector<8x3xf32>
    %c0_11 = arith.constant 0 : index
    %c0_12 = arith.constant 0 : index
    %16 = vector.load %arg5[%c0_11, %c0_12] : memref<8x3xf32, #tpu.memory_space<vmem>>, vector<8x3xf32>
    tpu.vector_store %arg5[%c0_11, %c0_12], %15 {strides = array<i32>} : memref<8x3xf32, #tpu.memory_space<vmem>>, vector<8x3xf32>,
    return
  }
}

</mosaic_0001>

<bundles_post_ra>
// kernel: tpu_custom_call.1
= control target key start
LH: loop header
LB: loop body
LE: loop exit
PB: predicated region body
PF: predicated region fallthrough
CT: control target
= control target key end

     0   :  { %v257_v0 = vmov 0.0|0.0   ;;  %vm258_vm0 = vmmov 0   ;;  %v259_v3 = vmov 0.0   ;;  %vm35_vm1 = vcmask 1045504   ;;  %s323_s1 = inlined_call_operand.vmem [shape: f32[22,32], index: 1, kind: input, shape index: {}]   ;;  %s324_s0 = inlined_call_operand.vmem [shape: f32[8,22], index: 0, kind: input, shape index: {}]   ;;  %s325_s3 = inlined_call_operand.vmem [shape: f32[32,3], index: 3, kind: input, shape index: {}]   ;;  %s326_s2 = inlined_call_operand.vmem [shape: f32[1,32], index: 2, kind: input, shape index: {}]   ;;  %s327_s4 = inlined_call_operand.vmem [shape: f32[1,3], index: 4, kind: input, shape index: {}]   ;;  %s328_s5 = inlined_call_operand.vmem [shape: f32[8,3], index: 5, kind: output, shape index: {}]  }
   0x1   :  { %241 = vmatprep.subr.bf16.mxu0 %v257_v0  ;;  %v21_v1 = vld [vmem:[%s323_s1] sm:$0xff]  ;;  %v22_v2 = vld [vmem:[%s323_s1 + $0x8] sm:$0xff]  ;;  %227 = vmatprep.mubr.msk.f32.mxu0 %vm258_vm0, %v259_v3  ;;  %v23_v5 = vld [vmem:[%s323_s1 + $0x10] sm:$0x3f]  ;;  %vm31_vm2 = vcmask 179200   ;;  %vm126_vm3 = vcmask 261120  }
   0x2   :  { %v242_v4 = vpack.c.bf16 %v22_v2, %v21_v1  ;;  %244 = vmatprep.subr.bf16.mxu1 %v257_v0  ;;  %238 = vmatprep.mubr.msk.f32.mxu1 %vm258_vm0, %v259_v3  ;;  %v20_v6 = vld [vmem:[%s324_s0] sm:$0xff]  ;;  %v116_v8 = vld [vmem:[%s325_s3 + $0x8] sm:$0xff]  ;;  %v117_v9 = vld [vmem:[%s325_s3 + $0x10] sm:$0xff]  ;;  %vm200_vm4 = vcmask 23552  }
   0x3   :  { %v115_v7 = vld [vmem:[%s325_s3] sm:$0xff]  ;;  %v118_v11 = vld [vmem:[%s325_s3 + $0x18] sm:$0xff] }
   0x4   :  { %243 = vmatpush3.bf16.msra.mxu0 %v242_v4  ;;  %v245_v10 = vpack.c.bf16 %v116_v8, %v115_v7  ;;  %v248_v12 = vpack.c.bf16 %v118_v11, %v117_v9  ;;  %v206_v13 = vld [vmem:[%s326_s2] ss:$0 sm:$0xff] }
   0x5   :  { %225 = vmatprep.subr.mxu0 %v259_v3  ;;  %v210_v21 = vld [vmem:[%s327_s4] ss:$0 sm:$0xff] }
   0x6   :  { %246 = vmatpush3.bf16.msra.mxu1 %v245_v10 }
   0x7   :  { %247 = vmatprep.subr.bf16.mxu1 %v257_v0 }
   0x8   :  { %226 = vmatpush3.msk.msra.mxu0 %vm35_vm1, %v23_v5 }
   0x9   :  { %228 = vmatmul.mubr.msk.f32.vlgmr.msra.gmra.mrb[0].mxu0 %vm31_vm2, %v20_v6 }
   0xa   :  { %249 = vmatpush3.bf16.msra.mxu1 %v248_v12 }
  0xdc   :  { %v105_v14 = vpop.f32.mrb[0].mxu0 }
  0xdd   :  { %v106_v15 = vadd.f32 %v206_v13, %v105_v14  ;;  %v229_v16 = vpop.f32.mrb[1].mxu0 }
  0xdf   :  { %v209_v17 = vmul.f32 -1.442695, %v106_v15 }
  0xe1   :  { %253 = vpow2.f32 %v209_v17 }
  0xeb   :  { %v254_v18 = vpop.eup %253 }
  0xec   :  { %v112_v19 = vadd.f32 1.0, %v254_v18 }
  0xee   :  { %255 = vrcp.f32 %v112_v19 }
  0xf8   :  { %v256_v20 = vpop.eup %255 }
  0xf9   :  { %239 = vmatmul.mubr.msk.f32.vlgmr.msra.gmra.mrb[0].mxu1 %vm126_vm3, %v256_v20 }
 0x1cc   :  { %v196_v22 = vpop.f32.mrb[0].mxu1 }
 0x1cd   :  { %v197_v23 = vadd.f32 %v210_v21, %v196_v22  ;;  %v240_v24 = vpop.f32.mrb[1].mxu1 }
 0x1cf   :  { %201 = vst.msk [vmem:[%s328_s5] sm:$0xff] %vm200_vm4, %v197_v23 }

</bundles_post_ra>
